<compile_context>
chip_gen: v7x
topology: tpu7x:2x2x1
jax: 0.10.0
libtpu: 0.0.40
codegen_flags: <defaults>
</compile_context>

<pallas_src>
import functools
import math

import jax
import jax.numpy as jnp
from jax.experimental import pallas as pl
from jax.experimental.pallas import tpu as pltpu


# ----------------------------------------------------------------------------
# Pallas kernel: one (batch, L-tile) block per grid step.
#   x_ref : (1, TL, 3*c_in)      bf16  (pre-shifted + channel-concatenated)
#   w_ref : (3*c_in, d_model_p)  bf16  (fused taps, VMEM-resident)
#   o_ref : (1, TL, d_model_p)
# ----------------------------------------------------------------------------
def _token_embedding_kernel(x_ref, w_ref, o_ref):
    o_ref[0] = jnp.dot(
        x_ref[0], w_ref[...], preferred_element_type=jnp.float32
    ).astype(o_ref.dtype)


def _choose_l_tile(L, d_model_p, out_itemsize, target_bytes=1 << 20):
    """L-tile: multiple of 8, output block ~<= 1 MiB, or full L when small."""
    if L <= 8 or L % 8 != 0:
        return L
    tl = target_bytes // (d_model_p * out_itemsize)
    tl = max(8, (tl // 8) * 8)
    return min(tl, L)


# ----------------------------------------------------------------------------
# Wrapper
# ----------------------------------------------------------------------------
def token_embedding(x, w_fused, d_model, *, out_dtype=None):
    """x: (B, L, c_in) float; w_fused: (3*c_in, d_model_padded) bf16.

    Returns (B, L, d_model) in `out_dtype` (default: x.dtype).
    """
    B, L, c_in = x.shape
    three_c, d_model_p = w_fused.shape
    assert three_c == 3 * c_in
    if out_dtype is None:
        out_dtype = x.dtype
    out_itemsize = jnp.dtype(out_dtype).itemsize

    # Circular shifts + channel-axis concat, built once (x is tiny vs. output):
    #   x_cat[:, t, 0:c]   = x[:, (t-1) % L]   (tap k=0)
    #   x_cat[:, t, c:2c]  = x[:, t]           (tap k=1)
    #   x_cat[:, t, 2c:3c] = x[:, (t+1) % L]   (tap k=2)
    x_prev = jnp.roll(x, 1, axis=1)
    x_next = jnp.roll(x, -1, axis=1)
    x_cat = jnp.concatenate([x_prev, x, x_next], axis=-1).astype(jnp.bfloat16)

    tl = _choose_l_tile(L, d_model_p, out_itemsize)
    n_l = pl.cdiv(L, tl)

    flops = 2 * B * L * three_c * d_model_p
    bytes_accessed = (B * L * three_c * 2 + three_c * d_model_p * 2
                      + B * L * d_model_p * out_itemsize)

    out = pl.pallas_call(
        _token_embedding_kernel,
        out_shape=jax.ShapeDtypeStruct((B, L, d_model_p), out_dtype),
        grid=(B, n_l),
        in_specs=[
            # Per-(batch, L-tile) input block; channels on lanes (no permute).
            pl.BlockSpec((1, tl, three_c), lambda b, j: (b, j, 0)),
            # Constant index_map: fused weights stay VMEM-resident.
            pl.BlockSpec((three_c, d_model_p), lambda b, j: (0, 0)),
        ],
        out_specs=pl.BlockSpec((1, tl, d_model_p), lambda b, j: (b, j, 0)),
        compiler_params=pltpu.CompilerParams(
            dimension_semantics=("parallel", "parallel")),
        cost_estimate=pl.CostEstimate(flops=flops, transcendentals=0,
                                      bytes_accessed=bytes_accessed),
    )(x_cat, w_fused)

    if d_model_p != d_model:
        out = out[..., :d_model]
    return out


# ----------------------------------------------------------------------------
# Parameter init (PyTorch layout + kaiming_normal_(fan_in, leaky_relu)) and a
# one-time re-layout into the fused, lane-padded (3*c_in, d_model_p) form.
# ----------------------------------------------------------------------------
def init_conv_weight(key, c_in, d_model):
    # PyTorch Conv1d weight layout: (out_channels, in_channels, kernel_size)
    fan_in = c_in * 3
    gain = math.sqrt(2.0 / (1.0 + 0.01 ** 2))      # leaky_relu, slope 0.01
    std = gain / math.sqrt(fan_in)
    return std * jax.random.normal(key, (d_model, c_in, 3), jnp.float32)


def prepare_conv_weight(w_torch_layout, compute_dtype=jnp.bfloat16):
    """(d_model, c_in, 3) -> fused (3*c_in, d_model_padded). Done ONCE."""
    d_model, c_in, k = w_torch_layout.shape
    # w_fused[kk*c_in + c, d] = W[d, c, kk], matching x_cat channel ordering.
    w = jnp.transpose(w_torch_layout, (2, 1, 0)).reshape(k * c_in, d_model)
    d_model_p = -(-d_model // 128) * 128           # pad to multiple of 128
    if d_model_p != d_model:
        w = jnp.pad(w, ((0, 0), (0, d_model_p - d_model)))  # zero-filled pad
    return w.astype(compute_dtype)


# ----------------------------------------------------------------------------
# Pure-JAX reference mirroring the kernel numerics (bf16 operands, f32 acc).
# ----------------------------------------------------------------------------
def _reference(x, w_torch_layout):
    L = x.shape[1]
    xb = x.astype(jnp.bfloat16).astype(jnp.float32)
    wb = w_torch_layout.astype(jnp.bfloat16).astype(jnp.float32)
    xp = jnp.concatenate([xb[:, -1:, :], xb, xb[:, :1, :]], axis=1)  # circular
    return sum(jnp.einsum("blc,dc->bld", xp[:, k:k + L, :], wb[:, :, k],
                          precision=jax.lax.Precision.HIGHEST)
               for k in range(3))


if __name__ == "__main__":
    # Small config consistent with TokenEmbedding: batch=2, seq_len=16,
    # c_in=4 input channels, d_model=32.
    B, L, c_in, d_model = 2, 16, 4, 32

    key = jax.random.PRNGKey(0)
    kx, kw = jax.random.split(key)
    x = jax.random.normal(kx, (B, L, c_in), jnp.float32)
    w = init_conv_weight(kw, c_in, d_model)
    w_fused = prepare_conv_weight(w)

    fwd = jax.jit(functools.partial(token_embedding, d_model=d_model))
    y = jax.block_until_ready(fwd(x, w_fused))

    ref = _reference(x, w)
    assert y.shape == (B, L, d_model), y.shape
    err = float(jnp.max(jnp.abs(y - ref)))
    assert jnp.allclose(y, ref, atol=1e-4, rtol=1e-4), f"mismatch, max abs err {err}"

    print("KERNEL_OK")
</pallas_src>

<mosaic_0001>
module attributes {stable_mosaic.version = 11 : i64} {
  func.func @_token_embedding_kernel(%arg0: i32, %arg1: i32, %arg2: memref<1x16x12xbf16, #tpu.memory_space<vmem>>, %arg3: memref<12x128xbf16, #tpu.memory_space<vmem>>, %arg4: memref<1x16x128xf32, #tpu.memory_space<vmem>>) attributes {dimension_semantics = [#tpu.dimension_semantics<parallel>, #tpu.dimension_semantics<parallel>], iteration_bounds = array<i64: 2, 1>, scalar_prefetch = 0 : i64, scratch_operands = 0 : i64, tpu.core_type = #tpu.core_type<tc>, window_params = [{transform_indices = @transform_0, window_bounds = array<i64: 1, 16, 12>}, {pipeline_mode = #tpu.pipeline_mode<synchronous>, transform_indices = @transform_1, window_bounds = array<i64: 12, 128>}, {transform_indices = @transform_2, window_bounds = array<i64: 1, 16, 128>}]} {
    %c0 = arith.constant 0 : index
    %c0_0 = arith.constant 0 : index
    %c0_1 = arith.constant 0 : index
    %0 = vector.load %arg2[%c0, %c0_0, %c0_1] : memref<1x16x12xbf16, #tpu.memory_space<vmem>>, vector<1x16x12xbf16>
    %1 = vector.shape_cast %0 : vector<1x16x12xbf16> to vector<16x12xbf16>
    %c0_2 = arith.constant 0 : index
    %c0_3 = arith.constant 0 : index
    %2 = vector.load %arg3[%c0_2, %c0_3] : memref<12x128xbf16, #tpu.memory_space<vmem>>, vector<12x128xbf16>
    %cst = arith.constant dense<0.000000e+00> : vector<16x128xf32>
    %3 = tpu.matmul %1, %2, %cst {dimension_numbers = #tpu.dot_dimension_numbers<[1], [0], [0], [1], [0, 0, 1, 1], [], []>} : vector<16x12xbf16>, vector<12x128xbf16>, vector<16x128xf32> -> vector<16x128xf32>
    %c0_4 = arith.constant 0 : index
    %c0_5 = arith.constant 0 : index
    %c0_6 = arith.constant 0 : index
    %4 = vector.load %arg4[%c0_4, %c0_5, %c0_6] : memref<1x16x128xf32, #tpu.memory_space<vmem>>, vector<1x16x128xf32>
    %5 = vector.shape_cast %4 : vector<1x16x128xf32> to vector<16x128xf32>
    %6 = vector.shape_cast %3 : vector<16x128xf32> to vector<1x16x128xf32>
    tpu.vector_store %arg4[%c0_4, %c0_5, %c0_6], %6 {strides = array<i32>} : memref<1x16x128xf32, #tpu.memory_space<vmem>>, vector<1x16x128xf32>,
    return
  }
  func.func @transform_0(%arg0: i32, %arg1: i32) -> (i32, i32, i32) {
    %c0_i32 = arith.constant 0 : i32
    %c0_i32_0 = arith.constant 0 : i32
    return %arg0, %arg1, %c0_i32 : i32, i32, i32
  }
  func.func @transform_1(%arg0: i32, %arg1: i32) -> (i32, i32) {
    %c0_i32 = arith.constant 0 : i32
    %c0_i32_0 = arith.constant 0 : i32
    %c0_i32_1 = arith.constant 0 : i32
    return %c0_i32, %c0_i32_0 : i32, i32
  }
  func.func @transform_2(%arg0: i32, %arg1: i32) -> (i32, i32, i32) {
    %c0_i32 = arith.constant 0 : i32
    %c0_i32_0 = arith.constant 0 : i32
    return %arg0, %arg1, %c0_i32 : i32, i32, i32
  }
}

</mosaic_0001>

<bundles_post_ra>
// kernel: token_embedding.1
= control target key start
LH: loop header
LB: loop body
LE: loop exit
PB: predicated region body
PF: predicated region fallthrough
CT: control target
= control target key end

     0   :  { %7 = vsyncpa [#allocation3], 0  ;;  %s639_s0 = inlined_call_operand.vmem [shape: bf16[2,16,12], index: 0, kind: input, shape index: {}]   ;;  %s640_s1 = inlined_call_operand.vmem [shape: bf16[12,128], index: 1, kind: input, shape index: {}]   ;;  %s641_s2 = inlined_call_operand.hbm [shape: f32[2,16,128], index: 2, kind: output, shape index: {}]  }
   0x1   :  { %9 = vsyncpa [#allocation3 + $0x1], 0  ;;  %s521_s9 = smov 0   ;;  %s523_s10 = smov 0  }
   0x2   :  { %s525_s11 = smov 0   ;;  %s527_s12 = smov 0  }
   0x3   :  { %s529_s13 = smov 0   ;;  %s531_s14 = smov 0  }
   0x4 LB: > { %s334_s15 = sadd.s32 4294967295, %s499_s14   ;;  %s335_s16 = sadd.s32 4294967294, %s499_s14   ;;  %s499_s14 = sphi %s531_s14, %s15_s14   ;;  %s495_s13 = sphi %s529_s13, %s648_s13   ;;  %s491_s12 = sphi %s527_s12, %s647_s12   ;;  %s487_s11 = sphi %s525_s11, %s646_s11   ;;  %s483_s10 = sphi %s523_s10, %s645_s10   ;;  %s479_s9 = sphi %s521_s9, %s644_s9  }
   0x5   : > { %s27_s17 = sadd.s32 1, %s495_s13  ;;  %s85_s18 = sadd.s32 1, %s487_s11 }
   0x6   : > { %p29_p0 = scmp.ge.s32.totalorder %s27_s17, 2  ;;  %p95_p1 = scmp.ne.s32.totalorder %s487_s11, %s483_s10 }
   0x7   : > { %p96_p2 = scmp.eq.s32.totalorder %s334_s15, 1  ;;  %p101_p3 = scmp.ne.s32.totalorder %s483_s10, %s479_s9 }
   0x8   : > { %s650_s17 = smov (%p29_p0, %s27_s17), 0  ;;  %p102_p5 = scmp.eq.s32.totalorder %s335_s16, 1 }
   0x9   : > { %p561_p4 = por %p96_p2, %p95_p1  ;;  %s80_s20 = ssub.s32 %s495_s13, %s650_s17 }
   0xa   : > { %p338_p6 = scmp.ge.s32.totalorder %s499_s14, 1  ;;  %p83_p7 = scmp.eq.s32.totalorder %s80_s20, 0 }
   0xb   : > { %p568_p8 = por %p102_p5, %p101_p3  ;;  %p136_p9 = scmp.lt.s32.totalorder %s499_s14, 3 }
   0xc   : > { %s574_s22 = scalar_select %p83_p7, %s487_s11, %s85_s18  }
   0xd   : > { %p137_p10 = pnand %p338_p6, %p136_p9 }
   0xe   : > { %vm192_vm0 = vcmask (!%p137_p10), 1045504   ;;  %v501_v0 = vmov (!%p137_p10), 0.0   ;;  %v419_v1 = vld [vmem:[%s640_s1] sm:$0x3f] (!%p137_p10)   ;;  %p163_p11 = scmp.lt.s32.totalorder (!%p137_p10), %s491_s12, 1  ;;  %vm502_vm1 = vmmov (!%p137_p10), 0  }
   0xf   : > { %140 = sbr.rel (%p137_p10) target bundleno = 256 (0x100), region = 28  ;;  %354 = vmatprep.subr.bf16.mxu0 (!%p137_p10), %v501_v0  ;;  %356 = vmatprep.mubr.msk.bf16.mxu0 (!%p137_p10), %vm502_vm1, %v501_v0  ;;  %v194_v2 = vsel (!%p137_p10), %vm192_vm0, %v419_v1, 0  ;;  %vm188_vm2 = vcmask (!%p137_p10), 97280   ;;  %s159_s30 = sand.u32 (!%p137_p10), 1, %s483_s10  }
  0x10   : > { %355 = vmatpush3.bf16.msra.mxu0 (!%p137_p10), %v194_v2  ;;  %s339_s3 = sshll.u32 (!%p137_p10), %s159_s30, 4  ;;  %s351_s6 = sshll.u32 (!%p137_p10), %s491_s12, 8 }
  0x11   : > { %s161_s4 = scalar_lea.vmem (!%p137_p10), [#allocation2], %s339_s3  ;;  %s591_s15 = scalar_lea.hbm (!%p137_p10), %s641_s2, %s351_s6 }
  0x12   : > { %s255_s5 = sshll.u32 (!%p137_p10), %s161_s4, 4  ;;  %s593_s16 = scalar_lea.sflag (!%p137_p10), [#allocation3], %s159_s30  ;;  %s586_s5 = int_to_ptr.vmem [resolvable:$true] %s255_s5 }
  0x13   : > { %s421_s18 = scalar_lea.vmem (!%p137_p10), %s586_s5, 256 }
  0x14   : > { %p422_p12 = scmp.ne.s32.totalorder (!%p137_p10), %s586_s5, %s421_s18 }
  0x16   : > { %s164_s25 = scalar_select %p163_p11, %s491_s12, 1 }
  0x17   : > { %p423_p13 = pnand %p422_p12, %p561_p4  ;;  %s503_s12 = smov [#allocation2]  }
  0x18   : > { %s350_s26 = sshll.u32 %s164_s25, 3  ;;  %s425_s20 = sshll.u32 %s503_s12, 4  ;;  %s426_s20 = int_to_ptr.vmem [resolvable:$false] %s425_s20 }
  0x19   : > { %s170_s29 = scalar_lea.vmem %s639_s0, %s350_s26  ;;  %p424_p0 = pneg %p423_p13 }
  0x1a   : > { %v420_v3 = vld [vmem:[%s170_s29] sm:$0xff]   ;;  %s427_s23 = scalar_lea.vmem %s426_s20, 512  ;;  %p428_p1 = scmp.lt.s32.totalorder %s586_s5, %s426_s20 }
  0x1b   : > { %357 = vmatmul.mubr.msk.bf16.vlgmr.msra.gmra.mrb[0].mxu0 %vm188_vm2, %v420_v3  ;;  %p429_p2 = scmp.lt.s32.totalorder %s427_s23, %s421_s18 }
  0x1d   : > { %p430_p3 = por %p429_p2, %p428_p1 }
  0x1f   : > { %p431_p5 = pnand %p430_p3, %p424_p0 }
  0xee   : > { %v230_v4 = vpop.f32.mrb[0].mxu0 }
  0xef   : > { %237 = vst [vmem:[%s161_s4] sm:$0xff] %v230_v4  ;;  %v358_v5 = vpop.f32.mrb[1].mxu0 }
  0xf0   : > { %v233_v6 = vpop.f32.mrb[2].mxu0 }
  0xf1   : > { %238 = vst [vmem:[%s161_s4 + $0x8] sm:$0xff] %v233_v6  ;;  %v359_v7 = vpop.f32.mrb[3].mxu0 }
  0xf2   : > { %434 = shalt.err (!%p431_p5)
}
  0xf3   : > { %s435_s24 = scalar_lea.hbm %s591_s15, 256  ;;  %s439_s27 = scalar_lea.hbm %s641_s2, 512 }
  0xf4   : > { %p436_p6 = scmp.ne.s32.totalorder %s591_s15, %s435_s24  ;;  %p440_p10 = scmp.lt.u32.totalorder %s591_s15, %s641_s2 }
  0xf5   : > { %p441_p11 = scmp.lt.u32.totalorder %s439_s27, %s435_s24  ;;  %p443_p13 = scmp.lt.u32.totalorder %s435_s24, %s591_s15 }
  0xf6   : > { %p437_p7 = pnand %p436_p6, %p561_p4 }
  0xf7   : > { %p442_p12 = por %p441_p11, %p440_p10 }
  0xf8   : > { %p438_p9 = pneg %p437_p7 }
  0xf9   : > { %p444_p0 = por %p443_p13, %p442_p12 }
  0xfb   : > { %p445_p1 = pnand %p444_p0, %p438_p9 }
  0xfd   : > { %448 = shalt.err (!%p445_p1)
}
  0xfe   : > { %s504_s30 = smov 128   ;;  %s505_s3 = smov 8  }
  0xff   : > { %360 = dma.vmem_to_hbm [thread:$0]  (%p561_p4), %s586_s5, 256, %s591_s15, %s593_s16, %s504_s30, %s504_s30, %s505_s3  }
 0x100 PF: > { %p366_p2 = scmp.ge.s32.totalorder %s499_s14, 2  ;;  %s270_s4 = sand.u32 1, %s479_s9  }
 0x101   : > { %s271_s6 = scalar_lea.sflag [#allocation3], %s270_s4 }
 0x102   : > { %p363_p3 = pnand %p366_p2, %p568_p8 }
 0x104   : > { %474 = dma.done.wait (!%p363_p3), %s271_s6, 256  }
 0x105   : > { %476 = vsyncadd (!%p363_p3), %s271_s6, 4294967040  ;;  %s15_s14 = sadd.s32 1, %s499_s14   ;;  %s644_s9 = smov %s483_s10 }
 0x106   : > { %p12_p5 = scmp.ge.s32.totalorder %s15_s14, 4   ;;  %s645_s10 = smov %s487_s11 }
 0x107   : > { %s646_s11 = smov %s574_s22  ;;  %s647_s12 = smov %s495_s13 }
 0x108   : > { %s648_s13 = smov %s650_s17  ;;  %14 = sbr.rel (!%p12_p5) target bundleno = 4 (0x4), region = 63 }
 0x10f   :  { %276 = vsyncpa [#allocation3], 1 }
 0x110   :  { %278 = vsyncpa [#allocation3 + $0x1], 1 }

</bundles_post_ra>
